<compile_context>
chip_gen: v7x
topology: tpu7x:2x2x1
jax: 0.10.0
libtpu: 0.0.40
codegen_flags: <defaults>
</compile_context>

<pallas_src>
import jax
import jax.numpy as jnp
from jax.experimental import pallas as pl
from jax.experimental.pallas import tpu as pltpu


def cam_kernel(x_ref, w1_ref, b1_ref, w2_ref, b2_ref, o_ref):
    # x_ref block: (TB, C, HW) float32
    xb = x_ref[...]
    tb, _, hw = xb.shape
    inv_hw = 1.0 / hw

    # Global avg / max pooling over the spatial (lane) axis.
    avg = jnp.sum(xb, axis=2) * inv_hw            # (TB, C)
    mx = jnp.max(xb, axis=2)                      # (TB, C)
    pooled = jnp.concatenate([avg, mx], axis=0)   # (2*TB, C)

    # Shared MLP: Linear(C -> C//r) -> ReLU -> Linear(C//r -> C) -> ReLU
    # (Dropout is identity in eval mode.)
    h = jnp.dot(pooled, w1_ref[...],
                preferred_element_type=jnp.float32) + b1_ref[...]     # (2*TB, hidden)
    h = jnp.maximum(h, 0.0)
    att = jnp.dot(h, w2_ref[...],
                  preferred_element_type=jnp.float32) + b2_ref[...]   # (2*TB, C)
    att = jnp.maximum(att, 0.0)

    # Sum over pool types, sigmoid, broadcast scale over the HW lanes.
    scale = jax.nn.sigmoid(att[:tb] + att[tb:])   # (TB, C)
    o_ref[...] = xb * scale[:, :, None]           # (TB, C, HW)


def cam_forward(x_nchw, w1, b1, w2, b2):
    """x_nchw: (B, C, H, W) float32.  Returns (B, C, H, W)."""
    B, C, H, W = x_nchw.shape
    HW = H * W
    hidden = w1.shape[1]

    # Free reshape (contiguous trailing dims): NCHW -> (B, C, HW).
    x = x_nchw.reshape(B, C, HW)
    b1_2d = b1.reshape(1, hidden)
    b2_2d = b2.reshape(1, C)

    # Batches per grid step: biggest divisor of B whose slab stays <= ~4 MiB,
    # so double-buffered in+out blocks fit comfortably inside the VMEM budget
    # on all chips (incl. v7x's 64 MiB physical VMEM).
    per_batch_bytes = C * HW * 4
    cap = max(1, (4 << 20) // per_batch_bytes)
    tb = 1
    for cand in range(min(B, cap), 0, -1):
        if B % cand == 0:
            tb = cand
            break
    # TODO(synk): for very large per-batch slabs (HW*C*4 >> 4 MiB) switch to an
    # HW-tiled two-pass scheme (tiled pool-accumulate + MLP, then tiled multiply).

    weight_bytes = (w1.size + w2.size + hidden + C) * 4
    block_bytes = tb * per_batch_bytes
    needed = 4 * block_bytes + 2 * weight_bytes + (2 << 20)   # dbl-buffered in+out
    vmem_limit = int(min(max(needed, 32 << 20), 48 << 20))

    cost = pl.CostEstimate(
        flops=8 * B * C * hidden + B * C * HW,
        transcendentals=B * C,
        bytes_accessed=2 * B * C * HW * 4 + weight_bytes,
    )

    out = pl.pallas_call(
        cam_kernel,
        out_shape=jax.ShapeDtypeStruct((B, C, HW), jnp.float32),
        grid_spec=pltpu.PrefetchScalarGridSpec(
            num_scalar_prefetch=0,
            grid=(B // tb,),
            in_specs=[
                pl.BlockSpec((tb, C, HW), lambda b: (b, 0, 0)),     # x
                pl.BlockSpec((C, hidden), lambda b: (0, 0)),        # W1
                pl.BlockSpec((1, hidden), lambda b: (0, 0)),        # b1
                pl.BlockSpec((hidden, C), lambda b: (0, 0)),        # W2
                pl.BlockSpec((1, C), lambda b: (0, 0)),             # b2
            ],
            out_specs=pl.BlockSpec((tb, C, HW), lambda b: (b, 0, 0)),
        ),
        compiler_params=pltpu.CompilerParams(
            dimension_semantics=("parallel",),
            vmem_limit_bytes=vmem_limit,
        ),
        cost_estimate=cost,
    )(x, w1, b1_2d, w2, b2_2d)

    return out.reshape(B, C, H, W)


def cam_reference(x_nchw, w1, b1, w2, b2):
    """Pure-JAX reference matching the PyTorch forward (eval mode)."""
    B, C, H, W = x_nchw.shape
    xf = x_nchw.reshape(B, C, H * W)
    avg = jnp.mean(xf, axis=2)      # (B, C)
    mx = jnp.max(xf, axis=2)        # (B, C)

    def mlp(p):
        h = jnp.maximum(p @ w1 + b1, 0.0)
        return jnp.maximum(h @ w2 + b2, 0.0)

    att = mlp(avg) + mlp(mx)        # (B, C)
    scale = jax.nn.sigmoid(att)[:, :, None, None]
    return x_nchw * scale


if __name__ == "__main__":
    # Small shapes consistent with the module: in_channels divisible by
    # reduction_ratio=16; HW = 16*16 = 256 keeps the output lane-dense.
    B, C, H, W = 2, 64, 16, 16
    reduction_ratio = 16
    hidden = C // reduction_ratio

    key = jax.random.PRNGKey(0)
    kx, kw1, kb1, kw2, kb2 = jax.random.split(key, 5)

    x = jax.random.normal(kx, (B, C, H, W), dtype=jnp.float32)
    # Deterministic synthetic parameters (nn.Linear weights stored transposed
    # so the kernel computes p @ W).
    w1 = jax.random.normal(kw1, (C, hidden), dtype=jnp.float32) * 0.1
    b1 = jax.random.normal(kb1, (hidden,), dtype=jnp.float32) * 0.1
    w2 = jax.random.normal(kw2, (hidden, C), dtype=jnp.float32) * 0.1
    b2 = jax.random.normal(kb2, (C,), dtype=jnp.float32) * 0.1

    out = cam_forward(x, w1, b1, w2, b2)
    out = jax.block_until_ready(out)

    ref = cam_reference(x, w1, b1, w2, b2)
    assert out.shape == (B, C, H, W)
    assert jnp.allclose(out, ref, atol=1e-5, rtol=1e-5), "mismatch vs reference"

    print("KERNEL_OK")
</pallas_src>

<mosaic_0001>
module attributes {stable_mosaic.version = 11 : i64} {
  func.func @cam_kernel(%arg0: i32, %arg1: memref<2x64x256xf32, #tpu.memory_space<vmem>>, %arg2: memref<64x4xf32, #tpu.memory_space<vmem>>, %arg3: memref<1x4xf32, #tpu.memory_space<vmem>>, %arg4: memref<4x64xf32, #tpu.memory_space<vmem>>, %arg5: memref<1x64xf32, #tpu.memory_space<vmem>>, %arg6: memref<2x64x256xf32, #tpu.memory_space<vmem>>) attributes {dimension_semantics = [#tpu.dimension_semantics<parallel>], iteration_bounds = array<i64: 1>, scalar_prefetch = 0 : i64, scratch_operands = 0 : i64, tpu.core_type = #tpu.core_type<tc>, window_params = [{transform_indices = @transform_0, window_bounds = array<i64: 2, 64, 256>}, {pipeline_mode = #tpu.pipeline_mode<synchronous>, transform_indices = @transform_1, window_bounds = array<i64: 64, 4>}, {pipeline_mode = #tpu.pipeline_mode<synchronous>, transform_indices = @transform_2, window_bounds = array<i64: 1, 4>}, {pipeline_mode = #tpu.pipeline_mode<synchronous>, transform_indices = @transform_3, window_bounds = array<i64: 4, 64>}, {pipeline_mode = #tpu.pipeline_mode<synchronous>, transform_indices = @transform_4, window_bounds = array<i64: 1, 64>}, {transform_indices = @transform_5, window_bounds = array<i64: 2, 64, 256>}]} {
    %c0 = arith.constant 0 : index
    %c0_0 = arith.constant 0 : index
    %c0_1 = arith.constant 0 : index
    %0 = vector.load %arg1[%c0, %c0_0, %c0_1] : memref<2x64x256xf32, #tpu.memory_space<vmem>>, vector<2x64x256xf32>
    %cst = arith.constant dense<0.000000e+00> : vector<2x64xf32>
    %1 = vector.multi_reduction <add>, %0, %cst [2] : vector<2x64x256xf32> to vector<2x64xf32>
    %cst_2 = arith.constant 3.906250e-03 : f32
    %2 = vector.broadcast %cst_2 : f32 to vector<2x64xf32>
    %3 = arith.mulf %1, %2 : vector<2x64xf32>
    %cst_3 = arith.constant dense<0xFF800000> : vector<2x64xf32>
    %4 = vector.multi_reduction <maximumf>, %0, %cst_3 [2] : vector<2x64x256xf32> to vector<2x64xf32>
    %5 = tpu.concatenate %3, %4 in 0 : vector<2x64xf32>, vector<2x64xf32> -> vector<4x64xf32>
    %c0_4 = arith.constant 0 : index
    %c0_5 = arith.constant 0 : index
    %6 = vector.load %arg2[%c0_4, %c0_5] : memref<64x4xf32, #tpu.memory_space<vmem>>, vector<64x4xf32>
    %cst_6 = arith.constant dense<0.000000e+00> : vector<4x4xf32>
    %7 = tpu.matmul %5, %6, %cst_6 {dimension_numbers = #tpu.dot_dimension_numbers<[1], [0], [0], [1], [0, 0, 1, 1], [], []>} : vector<4x64xf32>, vector<64x4xf32>, vector<4x4xf32> -> vector<4x4xf32>
    %c0_7 = arith.constant 0 : index
    %c0_8 = arith.constant 0 : index
    %8 = vector.load %arg3[%c0_7, %c0_8] : memref<1x4xf32, #tpu.memory_space<vmem>>, vector<1x4xf32>
    %9 = vector.broadcast %8 : vector<1x4xf32> to vector<4x4xf32>
    %10 = arith.addf %7, %9 : vector<4x4xf32>
    %cst_9 = arith.constant 0.000000e+00 : f32
    %11 = vector.broadcast %cst_9 : f32 to vector<4x4xf32>
    %12 = arith.maximumf %10, %11 : vector<4x4xf32>
    %c0_10 = arith.constant 0 : index
    %c0_11 = arith.constant 0 : index
    %13 = vector.load %arg4[%c0_10, %c0_11] : memref<4x64xf32, #tpu.memory_space<vmem>>, vector<4x64xf32>
    %cst_12 = arith.constant dense<0.000000e+00> : vector<4x64xf32>
    %14 = tpu.matmul %12, %13, %cst_12 {dimension_numbers = #tpu.dot_dimension_numbers<[1], [0], [0], [1], [0, 0, 1, 1], [], []>} : vector<4x4xf32>, vector<4x64xf32>, vector<4x64xf32> -> vector<4x64xf32>
    %c0_13 = arith.constant 0 : index
    %c0_14 = arith.constant 0 : index
    %15 = vector.load %arg5[%c0_13, %c0_14] : memref<1x64xf32, #tpu.memory_space<vmem>>, vector<1x64xf32>
    %16 = vector.broadcast %15 : vector<1x64xf32> to vector<4x64xf32>
    %17 = arith.addf %14, %16 : vector<4x64xf32>
    %cst_15 = arith.constant 0.000000e+00 : f32
    %18 = vector.broadcast %cst_15 : f32 to vector<4x64xf32>
    %19 = arith.maximumf %17, %18 : vector<4x64xf32>
    %20 = vector.extract_strided_slice %19 {offsets = [0, 0], sizes = [2, 64], strides = [1, 1]} : vector<4x64xf32> to vector<2x64xf32>
    %21 = vector.extract_strided_slice %19 {offsets = [2, 0], sizes = [2, 64], strides = [1, 1]} : vector<4x64xf32> to vector<2x64xf32>
    %22 = arith.addf %20, %21 : vector<2x64xf32>
    %23 = arith.negf %22 : vector<2x64xf32>
    %24 = math.exp %23 : vector<2x64xf32>
    %cst_16 = arith.constant 1.000000e+00 : f32
    %25 = vector.broadcast %cst_16 : f32 to vector<2x64xf32>
    %26 = arith.addf %25, %24 : vector<2x64xf32>
    %27 = arith.divf %25, %26 : vector<2x64xf32>
    %28 = vector.shape_cast %27 : vector<2x64xf32> to vector<2x64x1xf32>
    %29 = vector.broadcast %28 : vector<2x64x1xf32> to vector<2x64x256xf32>
    %30 = arith.mulf %0, %29 : vector<2x64x256xf32>
    %c0_17 = arith.constant 0 : index
    %c0_18 = arith.constant 0 : index
    %c0_19 = arith.constant 0 : index
    %31 = vector.load %arg6[%c0_17, %c0_18, %c0_19] : memref<2x64x256xf32, #tpu.memory_space<vmem>>, vector<2x64x256xf32>
    tpu.vector_store %arg6[%c0_17, %c0_18, %c0_19], %30 {strides = array<i32>} : memref<2x64x256xf32, #tpu.memory_space<vmem>>, vector<2x64x256xf32>,
    return
  }
  func.func @transform_0(%arg0: i32) -> (i32, i32, i32) {
    %c0_i32 = arith.constant 0 : i32
    %c0_i32_0 = arith.constant 0 : i32
    %c0_i32_1 = arith.constant 0 : i32
    return %arg0, %c0_i32, %c0_i32_0 : i32, i32, i32
  }
  func.func @transform_1(%arg0: i32) -> (i32, i32) {
    %c0_i32 = arith.constant 0 : i32
    %c0_i32_0 = arith.constant 0 : i32
    %c0_i32_1 = arith.constant 0 : i32
    return %c0_i32, %c0_i32_0 : i32, i32
  }
  func.func @transform_2(%arg0: i32) -> (i32, i32) {
    %c0_i32 = arith.constant 0 : i32
    %c0_i32_0 = arith.constant 0 : i32
    %c0_i32_1 = arith.constant 0 : i32
    return %c0_i32, %c0_i32_0 : i32, i32
  }
  func.func @transform_3(%arg0: i32) -> (i32, i32) {
    %c0_i32 = arith.constant 0 : i32
    %c0_i32_0 = arith.constant 0 : i32
    %c0_i32_1 = arith.constant 0 : i32
    return %c0_i32, %c0_i32_0 : i32, i32
  }
  func.func @transform_4(%arg0: i32) -> (i32, i32) {
    %c0_i32 = arith.constant 0 : i32
    %c0_i32_0 = arith.constant 0 : i32
    %c0_i32_1 = arith.constant 0 : i32
    return %c0_i32, %c0_i32_0 : i32, i32
  }
  func.func @transform_5(%arg0: i32) -> (i32, i32, i32) {
    %c0_i32 = arith.constant 0 : i32
    %c0_i32_0 = arith.constant 0 : i32
    %c0_i32_1 = arith.constant 0 : i32
    return %arg0, %c0_i32, %c0_i32_0 : i32, i32, i32
  }
}

</mosaic_0001>

<bundles_post_ra>
// kernel: tpu_custom_call.1
= control target key start
LH: loop header
LB: loop body
LE: loop exit
PB: predicated region body
PF: predicated region fallthrough
CT: control target
= control target key end

     0   :  { %10 = vsyncpa [#allocation3], 0  ;;  %s1221_s0 = inlined_call_operand.hbm [shape: f32[2,64,256], index: 0, kind: input, shape index: {}]   ;;  %s1222_s1 = inlined_call_operand.vmem [shape: f32[64,4], index: 1, kind: input, shape index: {}]   ;;  %s1223_s2 = inlined_call_operand.vmem [shape: f32[1,4], index: 2, kind: input, shape index: {}]   ;;  %s1224_s3 = inlined_call_operand.vmem [shape: f32[4,64], index: 3, kind: input, shape index: {}]   ;;  %s1225_s4 = inlined_call_operand.vmem [shape: f32[1,64], index: 4, kind: input, shape index: {}]   ;;  %s1226_s5 = inlined_call_operand.hbm [shape: f32[2,64,256], index: 5, kind: output, shape index: {}]  }
   0x1   :  { %11 = vsyncpa [#allocation4], 0  ;;  %s841_s18 = smov [#allocation2]   ;;  %s793_s22 = scalar_lea.hbm %s1221_s0, 4096 }
   0x2   :  { %s17_s19 = sshll.u32 %s841_s18, 4  ;;  %p794_p0 = scmp.ne.s32.totalorder %s1221_s0, %s793_s22  ;;  %s18_s19 = int_to_ptr.vmem [resolvable:$true] %s17_s19 }
   0x3   :  { %p797_p1 = scmp.lt.u32.totalorder %s793_s22, %s1221_s0 }
   0x5   :  { %p799_p2 = pnand %p797_p1, %p794_p0 }
   0x7   :  { %802 = shalt.err (!%p799_p2)
}
   0x8   :  { %s803_s27 = scalar_lea.vmem %s18_s19, 4096  ;;  %p808_p4 = scmp.lt.s32.totalorder %s18_s19, %s18_s19 }
   0x9   :  { %p804_p3 = scmp.ne.s32.totalorder %s18_s19, %s803_s27  ;;  %p809_p5 = scmp.lt.s32.totalorder %s803_s27, %s803_s27 }
   0xb   :  { %p810_p6 = por %p809_p5, %p808_p4 }
   0xd   :  { %p811_p7 = pnand %p810_p6, %p804_p3 }
   0xf   :  { %814 = shalt.err (!%p811_p7)
}
  0x10   :  { %s842_s28 = smov 256   ;;  %s843_s29 = smov 16  }
  0x11   :  { %23 = dma.hbm_to_vmem [thread:$0]  %s1221_s0, 4096, %s18_s19, [#allocation3], %s842_s28, %s842_s28, %s843_s29  }
  0x12   :  { %837 = dma.done.wait [#allocation3], 4096  }
  0x13   :  { %838 = vsyncadd [#allocation3], 4294963200  ;;  %v893_v0 = vld [vmem:[#allocation2 + $0x80] sm:$0xff]  ;;  %v895_v1 = vld [vmem:[#allocation2 + $0x88] sm:$0xff]  ;;  %vm845_vm0 = vmmov 0   ;;  %vm206_vm1 = vcmask 130112  }
  0x14   :  { %v897_v2 = vld [vmem:[#allocation2] sm:$0xff]  ;;  %v91_v3 = vadd.f32 %v895_v1, %v893_v0  ;;  %v901_v4 = vld [vmem:[#allocation2 + $0x8] sm:$0xff]  ;;  %v903_v5 = vld [vmem:[#allocation2 + $0x90] sm:$0xff]  ;;  %v155_v27 = vmax.f32 %v893_v0, %v895_v1  ;;  %vm213_vm2 = vcmask 195712   ;;  %vm220_vm3 = vcmask 261312  }
  0x15   :  { %1240 = vst [vmem:[#allocation8_spill] sm:$0xff] %v903_v5  ;;  %v905_v6 = vld [vmem:[#allocation2 + $0x98] sm:$0xff]  ;;  %v67_v7 = vadd.f32 %v901_v4, %v897_v2  ;;  %v909_v8 = vld [vmem:[#allocation2 + $0x10] sm:$0xff]  ;;  %v917_v12 = vld [vmem:[#allocation2 + $0xa0] sm:$0xff]  ;;  %v131_v25 = vmax.f32 %v897_v2, %v901_v4  ;;  %vm227_vm4 = vcmask 326912   ;;  %vm234_vm5 = vcmask 392512  }
  0x16   :  { %1241 = vst [vmem:[#allocation9_spill] sm:$0xff] %v905_v6  ;;  %v911_v9 = vld [vmem:[#allocation2 + $0x18] sm:$0xff]  ;;  %92 = vadd.xlane.f32.xlu1 %v91_v3  ;;  %v94_v10 = vadd.f32 %v905_v6, %v903_v5  ;;  %v919_v13 = vld [vmem:[#allocation2 + $0xa8] sm:$0xff]  ;;  %v921_v14 = vld [vmem:[#allocation2 + $0x20] sm:$0xff]  ;;  %v158_v26 = vmax.f32 %v903_v5, %v905_v6  ;;  %vm241_vm6 = vcmask 458112   ;;  %vm248_vm7 = vcmask 523712  }
  0x17   :  { %68 = vadd.xlane.f32.xlu0 %v67_v7  ;;  %v70_v11 = vadd.f32 %v911_v9, %v909_v8  ;;  %1242 = vst [vmem:[#allocation10_spill] sm:$0xff] %v919_v13  ;;  %v923_v15 = vld [vmem:[#allocation2 + $0x28] sm:$0xff]  ;;  %v97_v16 = vadd.f32 %v919_v13, %v917_v12  ;;  %v929_v18 = vld [vmem:[#allocation2 + $0xb0] sm:$0xff]  ;;  %v931_v19 = vld [vmem:[#allocation2 + $0xb8] sm:$0xff]  ;;  %v134_v24 = vmax.f32 %v909_v8, %v911_v9  ;;  %vm289_vm8 = vcmask 1041409  }
  0x18   :  { %v73_v17 = vadd.f32 %v923_v15, %v921_v14  ;;  %1243 = vst [vmem:[#allocation11_spill] sm:$0xff] %v929_v18  ;;  %1244 = vst [vmem:[#allocation12_spill] sm:$0xff] %v931_v19  ;;  %v933_v20 = vld [vmem:[#allocation2 + $0x30] sm:$0xff]  ;;  %v935_v21 = vld [vmem:[#allocation2 + $0x38] sm:$0xff]  ;;  %v100_v22 = vadd.f32 %v931_v19, %v929_v18  ;;  %v161_v34 = vmax.f32 %v917_v12, %v919_v13  ;;  %vm386_vm9 = vcmask 1043459  }
  0x19   :  { %v76_v23 = vadd.f32 %v935_v21, %v933_v20  ;;  %v949_v28 = vld [vmem:[#allocation2 + $0xc0] sm:$0xff]  ;;  %v951_v29 = vld [vmem:[#allocation2 + $0xc8] sm:$0xff]  ;;  %v137_v35 = vmax.f32 %v921_v14, %v923_v15  ;;  %v965_v36 = vld [vmem:[#allocation2 + $0xd0] sm:$0xff]  ;;  %v164_v42 = vmax.f32 %v929_v18, %v931_v19  ;;  %v140_v43 = vmax.f32 %v933_v20, %v935_v21 }
  0x1a   :  { %95 = vadd.xlane.f32.xlu1 %v94_v10  ;;  %1245 = vst [vmem:[#allocation13_spill] sm:$0xff] %v949_v28  ;;  %1246 = vst [vmem:[#allocation14_spill] sm:$0xff] %v951_v29  ;;  %v953_v30 = vld [vmem:[#allocation2 + $0x40] sm:$0xff]  ;;  %v955_v31 = vld [vmem:[#allocation2 + $0x48] sm:$0xff]  ;;  %v103_v32 = vadd.f32 %v951_v29, %v949_v28  ;;  %v167_v50 = vmax.f32 %v949_v28, %v951_v29  ;;  %vm389_vm10 = vcmask 1041408   ;;  %vm406_vm11 = vcmask 523264  }
  0x1b   :  { %71 = vadd.xlane.f32.xlu0 %v70_v11  ;;  %v79_v33 = vadd.f32 %v955_v31, %v953_v30  ;;  %1247 = vst [vmem:[#allocation15_spill] sm:$0xff] %v965_v36  ;;  %v967_v37 = vld [vmem:[#allocation2 + $0xd8] sm:$0xff]  ;;  %v969_v38 = vld [vmem:[#allocation2 + $0x50] sm:$0xff]  ;;  %v981_v44 = vld [vmem:[#allocation2 + $0xe0] sm:$0xff]  ;;  %v143_v51 = vmax.f32 %v953_v30, %v955_v31  ;;  %v844_v11 = vmov 0.0|0.0   ;;  %vm493_vm12 = vcmask 1043456  }
  0x1c   :  { %1248 = vst [vmem:[#allocation16_spill] sm:$0xff] %v967_v37  ;;  %v971_v39 = vld [vmem:[#allocation2 + $0x58] sm:$0xff]  ;;  %v106_v40 = vadd.f32 %v967_v37, %v965_v36  ;;  %1249 = vst [vmem:[#allocation17_spill] sm:$0xff] %v981_v44  ;;  %v983_v45 = vld [vmem:[#allocation2 + $0xe8] sm:$0xff]  ;;  %v170_v58 = vmax.f32 %v965_v36, %v967_v37  ;;  %770 = vmatprep.subr.bf16.mxu0 %v844_v11  ;;  %vm489_vm13 = vcmask 31744  }
  0x1d   :  { %v82_v41 = vadd.f32 %v971_v39, %v969_v38  ;;  %1250 = vst [vmem:[#allocation18_spill] sm:$0xff] %v983_v45  ;;  %v985_v46 = vld [vmem:[#allocation2 + $0x60] sm:$0xff]  ;;  %v987_v47 = vld [vmem:[#allocation2 + $0x68] sm:$0xff]  ;;  %v109_v48 = vadd.f32 %v983_v45, %v981_v44  ;;  %v997_v52 = vld [vmem:[#allocation2 + $0xf0] sm:$0xff]  ;;  %v146_v59 = vmax.f32 %v969_v38, %v971_v39  ;;  %v173_v60 = vmax.f32 %v981_v44, %v983_v45 }
  0x1e   :  { %98 = vadd.xlane.f32.xlu1 %v97_v16  ;;  %v85_v49 = vadd.f32 %v987_v47, %v985_v46  ;;  %1251 = vst [vmem:[#allocation19_spill] sm:$0xff] %v997_v52  ;;  %v999_v53 = vld [vmem:[#allocation2 + $0xf8] sm:$0xff]  ;;  %v1001_v54 = vld [vmem:[#allocation2 + $0x70] sm:$0xff]  ;;  %v149_v61 = vmax.f32 %v985_v46, %v987_v47  ;;  %v391_v3 = vld [vmem:[%s1222_s1] sm:$0xff] }
  0x1f   :  { %74 = vadd.xlane.f32.xlu0 %v73_v17  ;;  %1252 = vst [vmem:[#allocation20_spill] sm:$0xff] %v999_v53  ;;  %v1003_v55 = vld [vmem:[#allocation2 + $0x78] sm:$0xff]  ;;  %v112_v56 = vadd.f32 %v999_v53, %v997_v52  ;;  %v176_v62 = vmax.f32 %v997_v52, %v999_v53  ;;  %v392_v7 = vld [vmem:[%s1222_s1 + $0x8] sm:$0xff]  ;;  %v393_v16 = vld [vmem:[%s1222_s1 + $0x10] sm:$0xff] }
  0x20   :  { %v88_v57 = vadd.f32 %v1003_v55, %v1001_v54  ;;  %v152_v63 = vmax.f32 %v1001_v54, %v1003_v55  ;;  %v771_v10 = vpack.c.bf16 %v392_v7, %v391_v3  ;;  %v394_v17 = vld [vmem:[%s1222_s1 + $0x18] sm:$0xff] }
  0x22   :  { %101 = vadd.xlane.f32.xlu1 %v100_v22  ;;  %772 = vmatpush3.bf16.msra.mxu0 %v771_v10  ;;  %v774_v22 = vpack.c.bf16 %v394_v17, %v393_v16 }
  0x23   :  { %77 = vadd.xlane.f32.xlu0 %v76_v23  ;;  %773 = vmatprep.subr.bf16.mxu0 %v844_v11  ;;  %v395_v23 = vld [vmem:[%s1222_s1 + $0x20] sm:$0xff] }
  0x26   :  { %135 = vmax.xlane.f32.xlu1 %v134_v24  ;;  %775 = vmatpush3.bf16.msra.mxu0 %v774_v22  ;;  %v396_v24 = vld [vmem:[%s1222_s1 + $0x28] sm:$0xff] }
  0x27   :  { %132 = vmax.xlane.f32.xlu0 %v131_v25  ;;  %776 = vmatprep.subr.bf16.mxu0 %v844_v11  ;;  %v777_v25 = vpack.c.bf16 %v396_v24, %v395_v23 }
  0x2a   :  { %159 = vmax.xlane.f32.xlu1 %v158_v26  ;;  %778 = vmatpush3.bf16.msra.mxu0 %v777_v25  ;;  %v397_v26 = vld [vmem:[%s1222_s1 + $0x30] sm:$0xff] }
  0x2b   :  { %156 = vmax.xlane.f32.xlu0 %v155_v27  ;;  %779 = vmatprep.subr.bf16.mxu0 %v844_v11  ;;  %v398_v27 = vld [vmem:[%s1222_s1 + $0x38] sm:$0xff] }
  0x2e   :  { %104 = vadd.xlane.f32.xlu1 %v103_v32  ;;  %v780_v32 = vpack.c.bf16 %v398_v27, %v397_v26 }
  0x2f   :  { %80 = vadd.xlane.f32.xlu0 %v79_v33  ;;  %v846_v33 = vmov 0.0  }
  0x30   :  { %781 = vmatpush3.bf16.msra.mxu0 %v780_v32  ;;  %762 = vmatprep.mubr.msk.f32.mxu0 %vm845_vm0, %v846_v33 }
  0x31   :  { %765 = vmatprep.subr.mxu1 %v846_v33  ;;  %767 = vmatprep.mubr.msk.f32.mxu1 %vm845_vm0, %v846_v33 }
  0x32   :  { %162 = vmax.xlane.f32.xlu1 %v161_v34 }
  0x33   :  { %138 = vmax.xlane.f32.xlu0 %v137_v35 }
  0x36   :  { %107 = vadd.xlane.f32.xlu1 %v106_v40 }
  0x37   :  { %83 = vadd.xlane.f32.xlu0 %v82_v41 }
  0x3a   :  { %165 = vmax.xlane.f32.xlu1 %v164_v42 }
  0x3b   :  { %141 = vmax.xlane.f32.xlu0 %v140_v43 }
  0x3e   :  { %110 = vadd.xlane.f32.xlu1 %v109_v48 }
  0x3f   :  { %86 = vadd.xlane.f32.xlu0 %v85_v49 }
  0x42   :  { %168 = vmax.xlane.f32.xlu1 %v167_v50 }
  0x43   :  { %144 = vmax.xlane.f32.xlu0 %v143_v51 }
  0x46   :  { %113 = vadd.xlane.f32.xlu1 %v112_v56 }
  0x47   :  { %89 = vadd.xlane.f32.xlu0 %v88_v57 }
  0x4a   :  { %171 = vmax.xlane.f32.xlu1 %v170_v58 }
  0x4b   :  { %147 = vmax.xlane.f32.xlu0 %v146_v59 }
  0x4e   :  { %174 = vmax.xlane.f32.xlu1 %v173_v60 }
  0x4f   :  { %150 = vmax.xlane.f32.xlu0 %v149_v61 }
  0x52   :  { %177 = vmax.xlane.f32.xlu1 %v176_v62  ;;  %v195_v62 = vlaneseq }
  0x53   :  { %153 = vmax.xlane.f32.xlu0 %v152_v63 }
  0x54   :  { %v196_v7 = vand.u32 127, %v195_v62  ;;  %v1057_v10 = vshrl.u32 %v195_v62, 7 }
  0x56   :  { %v201_v16 = vadd.s32 4294967288, %v196_v7  ;;  %v208_v17 = vadd.s32 4294967280, %v196_v7  ;;  %v215_v23 = vadd.s32 4294967272, %v196_v7  ;;  %v1064_v24 = vsub.s32 %v196_v7, %v1057_v10 }
  0x57   :  { %v222_v53 = vadd.s32 4294967264, %v196_v7  ;;  %v229_v52 = vadd.s32 4294967256, %v196_v7  ;;  %v236_v44 = vadd.s32 4294967248, %v196_v7 }
  0x58   :  { %v1067_v26 = vsub.s32 %v201_v16, %v1057_v10  ;;  %v1070_v32 = vsub.s32 %v208_v17, %v1057_v10  ;;  %v1073_v45 = vsub.s32 %v215_v23, %v1057_v10 }
  0xa3   :  { %v93_v34 = vpop.xlane.xlu1 %92 }
  0xa4   :  { %v69_v35 = vpop.xlane.xlu0 %68  ;;  %v123_v37 = vmul.f32 0.00390625, %v93_v34 }
  0xa5   :  { %v115_v19 = vmul.f32 0.00390625, %v69_v35  ;;  %v1085_v35 = vsub.s32 %v229_v52, %v1057_v10 }
  0xa7   :  { %v96_v40 = vpop.xlane.xlu1 %95 }
  0xa8   :  { %v72_v41 = vpop.xlane.xlu0 %71  ;;  %v124_v27 = vmul.f32 0.00390625, %v96_v40  ;;  %v243_v40 = vadd.s32 4294967240, %v196_v7 }
  0xa9   :  { %v116_v62 = vmul.f32 0.00390625, %v72_v41 }
  0xaa   :  { %v257_v17 = vrot.slane %v124_v27, %v1067_v26  ;;  %v1090_v27 = vsub.s32 %v236_v44, %v1057_v10 }
  0xab   :  { %v99_v42 = vpop.xlane.xlu1 %98  ;;  %v205_v34 = vrot.slane %v116_v62, %v1067_v26 }
  0xac   :  { %v75_v43 = vpop.xlane.xlu0 %74  ;;  %v125_v36 = vmul.f32 0.00390625, %v99_v42  ;;  %v1082_v42 = vsub.s32 %v222_v53, %v1057_v10  ;;  %v1096_v53 = vsub.s32 %v243_v40, %v1057_v10 }
  0xad   :  { %v117_v18 = vmul.f32 0.00390625, %v75_v43  ;;  %v253_v43 = vrot.slane %v123_v37, %v1064_v24 }
  0xaf   :  { %v102_v48 = vpop.xlane.xlu1 %101  ;;  %v212_v6 = vrot.slane %v117_v18, %v1070_v32 }
  0xb0   :  { %v78_v49 = vpop.xlane.xlu0 %77  ;;  %v126_v16 = vmul.f32 0.00390625, %v102_v48  ;;  %v262_v48 = vrot.slane %v125_v36, %v1070_v32 }
  0xb1   :  { %v118_v28 = vmul.f32 0.00390625, %v78_v49  ;;  %v200_v49 = vrot.slane %v115_v19, %v1064_v24 }
  0xb2   :  { %v267_v62 = vrot.slane %v126_v16, %v1073_v45 }
  0xb3   :  { %v1045_v50 = vpop.xlane.xlu1 %135  ;;  %v219_v37 = vrot.slane %v118_v28, %v1073_v45  ;;  %v207_v18 = vsel %vm206_vm1, %v205_v34, %v200_v49 }
  0xb4   :  { %v1047_v51 = vpop.xlane.xlu0 %132  ;;  %v315_v36 = vrot.slane %v1045_v50, %v1067_v26 }
  0xb5   :  { %v311_v44 = vrot.slane %v1047_v51, %v1064_v24  ;;  %v214_v51 = vsel %vm213_vm2, %v212_v6, %v207_v18 }
  0xb7   :  { %v1049_v56 = vpop.xlane.xlu1 %159 }
  0xb8   :  { %v1051_v57 = vpop.xlane.xlu0 %156 }
  0xb9   :  { %v350_v16 = vrot.slane %v1051_v57, %v1064_v24  ;;  %v316_v57 = vsel %vm206_vm1, %v315_v36, %v311_v44 }
  0xbb   :  { %v105_v58 = vpop.xlane.xlu1 %104 }
  0xbc   :  { %v81_v59 = vpop.xlane.xlu0 %80  ;;  %v127_v23 = vmul.f32 0.00390625, %v105_v58  ;;  %v258_v58 = vsel %vm206_vm1, %v257_v17, %v253_v43 }
  0xbd   :  { %v119_v7 = vmul.f32 0.00390625, %v81_v59  ;;  %v354_v59 = vrot.slane %v1049_v56, %v1067_v26  ;;  %v263_v28 = vsel %vm213_vm2, %v262_v48, %v258_v58  ;;  %v221_v56 = vsel %vm220_vm3, %v219_v37, %v214_v51 }
  0xbe   :  { %v272_v40 = vrot.slane %v127_v23, %v1082_v42  ;;  %v268_v5 = vsel %vm220_vm3, %v267_v62, %v263_v28 }
  0xbf   :  { %v1053_v60 = vpop.xlane.xlu1 %162  ;;  %v226_v50 = vrot.slane %v119_v7, %v1082_v42  ;;  %v355_v48 = vsel %vm206_vm1, %v354_v59, %v350_v16 }
  0xc0   :  { %v1055_v61 = vpop.xlane.xlu0 %138  ;;  %v359_v24 = vrot.slane %v1053_v60, %v1070_v32 }
  0xc1   :  { %v320_v6 = vrot.slane %v1055_v61, %v1070_v32 }
  0xc2   :  { %v360_v58 = vsel %vm213_vm2, %v359_v24, %v355_v48 }
  0xc3   :  { %v108_v63 = vpop.xlane.xlu1 %107 }
  0xc4   :  { %v84_v3 = vpop.xlane.xlu0 %83  ;;  %v128_v17 = vmul.f32 0.00390625, %v108_v63  ;;  %v273_v63 = vsel %vm227_vm4, %v272_v40, %v268_v5 }
  0xc5   :  { %v120_v43 = vmul.f32 0.00390625, %v84_v3 }
  0xc7   :  { %v1059_v11 = vpop.xlane.xlu1 %165  ;;  %v233_v7 = vrot.slane %v120_v43, %v1085_v35 }
  0xc8   :  { %v1061_v22 = vpop.xlane.xlu0 %141  ;;  %v364_v60 = vrot.slane %v1059_v11, %v1073_v45 }
  0xc9   :  { %v325_v62 = vrot.slane %v1061_v22, %v1073_v45  ;;  %v321_v45 = vsel %vm213_vm2, %v320_v6, %v316_v57 }
  0xca   :  { %v365_v16 = vsel %vm220_vm3, %v364_v60, %v360_v58 }
  0xcb   :  { %v111_v25 = vpop.xlane.xlu1 %110 }
  0xcc   :  { %v87_v33 = vpop.xlane.xlu0 %86  ;;  %v129_v34 = vmul.f32 0.00390625, %v111_v25  ;;  %v228_v25 = vsel %vm227_vm4, %v226_v50, %v221_v56 }
  0xcd   :  { %v121_v49 = vmul.f32 0.00390625, %v87_v33  ;;  %v277_v33 = vrot.slane %v128_v17, %v1085_v35  ;;  %v235_v59 = vsel %vm234_vm5, %v233_v7, %v228_v25 }
  0xce   :  { %v282_v5 = vrot.slane %v129_v34, %v1090_v27 }
  0xcf   :  { %v1075_v29 = vpop.xlane.xlu1 %168 }
  0xd0   :  { %v1078_v41 = vpop.xlane.xlu0 %144  ;;  %v369_v61 = vrot.slane %v1075_v29, %v1082_v42  ;;  %v278_v29 = vsel %vm234_vm5, %v277_v33, %v273_v63 }
  0xd1   :  { %v330_v37 = vrot.slane %v1078_v41, %v1082_v42  ;;  %v326_v42 = vsel %vm220_vm3, %v325_v62, %v321_v45  ;;  %v731_v62 = vld [vmem:[%s1225_s4] ss:$0 sm:$0xff]  ;;  %v580_v45 = vsub.s32 0, %v1057_v10 }
  0xd2   :  { %v370_v28 = vsel %vm227_vm4, %v369_v61, %v365_v16 }
  0xd3   :  { %v114_v52 = vpop.xlane.xlu1 %113 }
  0xd4   :  { %v90_v19 = vpop.xlane.xlu0 %89  ;;  %v130_v26 = vmul.f32 0.00390625, %v114_v52  ;;  %v240_v52 = vrot.slane %v121_v49, %v1090_v27 }
  0xd5   :  { %v122_v3 = vmul.f32 0.00390625, %v90_v19 }
  0xd6   :  { %v287_v36 = vrot.slane %v130_v26, %v1096_v53  ;;  %v242_v40 = vsel %vm241_vm6, %v240_v52, %v235_v59 }
  0xd7   :  { %v172_v13 = vpop.xlane.xlu1 %171  ;;  %v247_v22 = vrot.slane %v122_v3, %v1096_v53  ;;  %v481_v3 = vld [vmem:[%s1224_s3] sm:$0xf] }
  0xd8   :  { %v148_v23 = vpop.xlane.xlu0 %147  ;;  %v374_v11 = vrot.slane %v172_v13, %v1085_v35  ;;  %v283_v13 = vsel %vm241_vm6, %v282_v5, %v278_v29  ;;  %766 = vmatpush3.msk.msra.mxu1 %vm493_vm12, %v481_v3  ;;  %v1258_v3 = vld [vmem:[#allocation11_spill] sm:$0xff] }
  0xd9   :  { %v335_v19 = vrot.slane %v148_v23, %v1085_v35  ;;  %v331_v35 = vsel %vm227_vm4, %v330_v37, %v326_v42  ;;  %v288_v17 = vsel %vm248_vm7, %v287_v36, %v283_v13 }
  0xda   :  { %v375_v43 = vsel %vm234_vm5, %v374_v11, %v370_v28 }
  0xdb   :  { %v175_v32 = vpop.xlane.xlu1 %174  ;;  %v336_v49 = vsel %vm234_vm5, %v335_v19, %v331_v35 }
  0xdc   :  { %v151_v44 = vpop.xlane.xlu0 %150  ;;  %v379_v18 = vrot.slane %v175_v32, %v1090_v27 }
  0xdd   :  { %v340_v41 = vrot.slane %v151_v44, %v1090_v27  ;;  %v249_v27 = vsel %vm248_vm7, %v247_v22, %v242_v40 }
  0xde   :  { %v380_v56 = vsel %vm241_vm6, %v379_v18, %v375_v43  ;;  %v290_v48 = vsel %vm289_vm8, %v288_v17, %v249_v27  ;;  %v615_v18 = vsub.s32 1, %v1057_v10 }
  0xdf   :  { %v178_v50 = vpop.xlane.xlu1 %177  ;;  %v341_v24 = vsel %vm241_vm6, %v340_v41, %v336_v49 }
  0xe0   :  { %v384_v51 = vrot.slane %v178_v50, %v1096_v53  ;;  %v154_v34 = vpop.xlane.xlu0 %153 }
  0xe1   :  { %v345_v57 = vrot.slane %v154_v34, %v1096_v53  ;;  %v729_v53 = vld [vmem:[%s1223_s2] ss:$0 sm:$0xff]  ;;  %s847_s2 = smov [#allocation5]  }
  0xe2   :  { %v385_v26 = vsel %vm248_vm7, %v384_v51, %v380_v56  ;;  %s717_s3 = sshll.u32 %s847_s2, 4  ;;  %s718_s3 = int_to_ptr.vmem [resolvable:$true] %s717_s3 }
  0xe3   :  { %v346_v23 = vsel %vm248_vm7, %v345_v57, %v341_v24  ;;  %v1253_v57 = vld [vmem:[#allocation10_spill] sm:$0xff]  ;;  %s815_s4 = scalar_lea.vmem %s718_s3, 4096  ;;  %p820_p9 = scmp.lt.s32.totalorder %s718_s3, %s718_s3 }
  0xe4   :  { %v387_v63 = vsel %vm386_vm9, %v385_v26, %v346_v23  ;;  %v1255_v26 = vld [vmem:[#allocation9_spill] sm:$0xff]  ;;  %p816_p8 = scmp.ne.s32.totalorder %s718_s3, %s815_s4  ;;  %p821_p10 = scmp.lt.s32.totalorder %s815_s4, %s815_s4 }
  0xe5   :  { %v390_v6 = vsel %vm389_vm10, %v290_v48, %v387_v63  ;;  %v1256_v48 = vld [vmem:[#allocation13_spill] sm:$0xff] }
  0xe6   :  { %763 = vmatmul.mubr.msk.f32.vlgmr.msra.gmra.mrb[0].mxu0 %vm406_vm11, %v390_v6  ;;  %v1257_v6 = vld [vmem:[#allocation14_spill] sm:$0xff]  ;;  %p822_p11 = por %p821_p10, %p820_p9 }
  0xe8   :  { %p823_p12 = pnand %p822_p11, %p816_p8 }
 0x1b9   :  { %v476_v25 = vpop.f32.mrb[0].mxu0 }
 0x1ba   :  { %v477_v33 = vadd.f32 %v729_v53, %v476_v25  ;;  %v764_v7 = vpop.f32.mrb[1].mxu0  ;;  %v1259_v25 = vld [vmem:[#allocation12_spill] sm:$0xff] }
 0x1bb   :  { %v1260_v7 = vld [vmem:[#allocation17_spill] sm:$0xff] }
 0x1bc   :  { %v480_v60 = vmax.f32 %v477_v33, 0.0 }
 0x1be   :  { %768 = vmatmul.mubr.msk.f32.vlgmr.msra.gmra.mrb[0].mxu1 %vm489_vm13, %v480_v60 }
 0x291   :  { %v563_v5 = vpop.f32.mrb[0].mxu1 }
 0x292   :  { %v564_v52 = vadd.f32 %v731_v62, %v563_v5  ;;  %v769_v61 = vpop.f32.mrb[1].mxu1  ;;  %v1261_v62 = vld [vmem:[#allocation18_spill] sm:$0xff] }
 0x293   :  { %v1262_v61 = vld [vmem:[#allocation15_spill] sm:$0xff] }
 0x294   :  { %v567_v32 = vmax.f32 %v564_v52, 0.0 }
 0x296   :  { %v569_v58 = vrot.slane %v567_v32, 2 }
 0x298   :  { %v571_v37 = vadd.f32 %v569_v58, %v567_v32  ;;  %v1263_v58 = vld [vmem:[#allocation16_spill] sm:$0xff] }
 0x29a   :  { %v734_v36 = vmul.f32 -1.442695, %v571_v37 }
 0x29c   :  { %789 = vpow2.f32 %v734_v36 }
 0x2a6   :  { %v790_v11 = vpop.eup %789 }
 0x2a7   :  { %v575_v44 = vadd.f32 1.0, %v790_v11  ;;  %v1264_v11 = vld [vmem:[#allocation19_spill] sm:$0xff] }
 0x2a9   :  { %791 = vrcp.f32 %v575_v44 }
 0x2b3   :  { %v792_v22 = vpop.eup %791 }
 0x2b4   :  { %v581_v19 = vrot.slane %v792_v22, %v580_v45  ;;  %v616_v29 = vrot.slane %v792_v22, %v615_v18  ;;  %v1265_v45 = vld [vmem:[#allocation20_spill] sm:$0xff] }
 0x2b6   :  { %587 = vbcast.lane.b32.xlu1 %v581_v19, 264  ;;  %583 = vbcast.lane.b32.xlu0 %v581_v19, 256 }
 0x2ba   :  { %591 = vbcast.lane.b32.xlu1 %v581_v19, 272  ;;  %599 = vbcast.lane.b32.xlu0 %v581_v19, 288 }
 0x2be   :  { %595 = vbcast.lane.b32.xlu1 %v581_v19, 280  ;;  %607 = vbcast.lane.b32.xlu0 %v581_v19, 304 }
 0x2c2   :  { %603 = vbcast.lane.b32.xlu1 %v581_v19, 296  ;;  %618 = vbcast.lane.b32.xlu0 %v616_v29, 256 }
 0x2c6   :  { %611 = vbcast.lane.b32.xlu1 %v581_v19, 312  ;;  %626 = vbcast.lane.b32.xlu0 %v616_v29, 272 }
 0x2ca   :  { %622 = vbcast.lane.b32.xlu1 %v616_v29, 264  ;;  %634 = vbcast.lane.b32.xlu0 %v616_v29, 288 }
 0x2ce   :  { %630 = vbcast.lane.b32.xlu1 %v616_v29, 280  ;;  %642 = vbcast.lane.b32.xlu0 %v616_v29, 304 }
 0x2d2   :  { %638 = vbcast.lane.b32.xlu1 %v616_v29, 296 }
 0x2d6   :  { %646 = vbcast.lane.b32.xlu1 %v616_v29, 312 }
 0x328   :  { %v588_v59 = vpop.permute.xlu1 %587  ;;  %v584_v16 = vpop.permute.xlu0 %583 }
 0x329   :  { %v650_v41 = vmul.f32 %v588_v59, %v909_v8  ;;  %v651_v42 = vmul.f32 %v588_v59, %v911_v9  ;;  %v648_v10 = vmul.f32 %v584_v16, %v897_v2  ;;  %v649_v13 = vmul.f32 %v584_v16, %v901_v4 }
 0x32b   :  { %682 = vst [vmem:[#allocation5 + $0x10] sm:$0xff] %v650_v41  ;;  %683 = vst [vmem:[#allocation5 + $0x18] sm:$0xff] %v651_v42 }
 0x32c   :  { %680 = vst [vmem:[#allocation5] sm:$0xff] %v648_v10  ;;  %681 = vst [vmem:[#allocation5 + $0x8] sm:$0xff] %v649_v13  ;;  %v592_v40 = vpop.permute.xlu1 %591  ;;  %v600_v28 = vpop.permute.xlu0 %599 }
 0x32d   :  { %v652_v50 = vmul.f32 %v592_v40, %v921_v14  ;;  %v653_v35 = vmul.f32 %v592_v40, %v923_v15  ;;  %v656_v17 = vmul.f32 %v600_v28, %v953_v30  ;;  %v657_v8 = vmul.f32 %v600_v28, %v955_v31 }
 0x32f   :  { %684 = vst [vmem:[#allocation5 + $0x20] sm:$0xff] %v652_v50  ;;  %685 = vst [vmem:[#allocation5 + $0x28] sm:$0xff] %v653_v35 }
 0x330   :  { %688 = vst [vmem:[#allocation5 + $0x40] sm:$0xff] %v656_v17  ;;  %689 = vst [vmem:[#allocation5 + $0x48] sm:$0xff] %v657_v8  ;;  %v596_v2 = vpop.permute.xlu1 %595  ;;  %v608_v4 = vpop.permute.xlu0 %607 }
 0x331   :  { %v654_v9 = vmul.f32 %v596_v2, %v933_v20  ;;  %v655_v43 = vmul.f32 %v596_v2, %v935_v21  ;;  %v660_v51 = vmul.f32 %v608_v4, %v985_v46  ;;  %v661_v14 = vmul.f32 %v608_v4, %v987_v47 }
 0x333   :  { %686 = vst [vmem:[#allocation5 + $0x30] sm:$0xff] %v654_v9  ;;  %687 = vst [vmem:[#allocation5 + $0x38] sm:$0xff] %v655_v43 }
 0x334   :  { %692 = vst [vmem:[#allocation5 + $0x60] sm:$0xff] %v660_v51  ;;  %693 = vst [vmem:[#allocation5 + $0x68] sm:$0xff] %v661_v14  ;;  %v604_v15 = vpop.permute.xlu1 %603  ;;  %v619_v30 = vpop.permute.xlu0 %618 }
 0x335   :  { %v658_v31 = vmul.f32 %v604_v15, %v969_v38  ;;  %v659_v34 = vmul.f32 %v604_v15, %v971_v39  ;;  %v664_v27 = vmul.f32 %v619_v30, %v893_v0  ;;  %v665_v20 = vmul.f32 %v619_v30, %v895_v1  ;;  %v1254_v39 = vld [vmem:[#allocation8_spill] sm:$0xff] }
 0x337   :  { %690 = vst [vmem:[#allocation5 + $0x50] sm:$0xff] %v658_v31  ;;  %691 = vst [vmem:[#allocation5 + $0x58] sm:$0xff] %v659_v34 }
 0x338   :  { %696 = vst [vmem:[#allocation5 + $0x80] sm:$0xff] %v664_v27  ;;  %697 = vst [vmem:[#allocation5 + $0x88] sm:$0xff] %v665_v20  ;;  %v612_v21 = vpop.permute.xlu1 %611  ;;  %v627_v46 = vpop.permute.xlu0 %626 }
 0x339   :  { %v662_v47 = vmul.f32 %v612_v21, %v1001_v54  ;;  %v663_v49 = vmul.f32 %v612_v21, %v1003_v55  ;;  %v668_v56 = vmul.f32 %v627_v46, %v917_v12  ;;  %v669_v38 = vmul.f32 %v627_v46, %v1253_v57 }
 0x33b   :  { %694 = vst [vmem:[#allocation5 + $0x70] sm:$0xff] %v662_v47  ;;  %695 = vst [vmem:[#allocation5 + $0x78] sm:$0xff] %v663_v49 }
 0x33c   :  { %700 = vst [vmem:[#allocation5 + $0xa0] sm:$0xff] %v668_v56  ;;  %701 = vst [vmem:[#allocation5 + $0xa8] sm:$0xff] %v669_v38  ;;  %v623_v0 = vpop.permute.xlu1 %622  ;;  %v635_v1 = vpop.permute.xlu0 %634 }
 0x33d   :  { %v666_v24 = vmul.f32 %v623_v0, %v1254_v39  ;;  %v667_v23 = vmul.f32 %v623_v0, %v1255_v26  ;;  %v672_v63 = vmul.f32 %v635_v1, %v1256_v48  ;;  %v673_v54 = vmul.f32 %v635_v1, %v1257_v6 }
 0x33f   :  { %698 = vst [vmem:[#allocation5 + $0x90] sm:$0xff] %v666_v24  ;;  %699 = vst [vmem:[#allocation5 + $0x98] sm:$0xff] %v667_v23 }
 0x340   :  { %704 = vst [vmem:[#allocation5 + $0xc0] sm:$0xff] %v672_v63  ;;  %705 = vst [vmem:[#allocation5 + $0xc8] sm:$0xff] %v673_v54  ;;  %v631_v12 = vpop.permute.xlu1 %630  ;;  %v643_v55 = vpop.permute.xlu0 %642 }
 0x341   :  { %v670_v53 = vmul.f32 %v631_v12, %v1258_v3  ;;  %v671_v33 = vmul.f32 %v631_v12, %v1259_v25  ;;  %v676_v60 = vmul.f32 %v643_v55, %v1260_v7  ;;  %v677_v5 = vmul.f32 %v643_v55, %v1261_v62 }
 0x343   :  { %702 = vst [vmem:[#allocation5 + $0xb0] sm:$0xff] %v670_v53  ;;  %703 = vst [vmem:[#allocation5 + $0xb8] sm:$0xff] %v671_v33 }
 0x344   :  { %708 = vst [vmem:[#allocation5 + $0xe0] sm:$0xff] %v676_v60  ;;  %709 = vst [vmem:[#allocation5 + $0xe8] sm:$0xff] %v677_v5  ;;  %v639_v52 = vpop.permute.xlu1 %638 }
 0x345   :  { %v674_v32 = vmul.f32 %v639_v52, %v1262_v61  ;;  %v675_v37 = vmul.f32 %v639_v52, %v1263_v58 }
 0x347   :  { %706 = vst [vmem:[#allocation5 + $0xd0] sm:$0xff] %v674_v32  ;;  %707 = vst [vmem:[#allocation5 + $0xd8] sm:$0xff] %v675_v37 }
 0x348   :  { %v647_v36 = vpop.permute.xlu1 %646 }
 0x349   :  { %v678_v44 = vmul.f32 %v647_v36, %v1264_v11  ;;  %v679_v22 = vmul.f32 %v647_v36, %v1265_v45 }
 0x34b   :  { %710 = vst [vmem:[#allocation5 + $0xf0] sm:$0xff] %v678_v44  ;;  %711 = vst [vmem:[#allocation5 + $0xf8] sm:$0xff] %v679_v22 }
 0x34c   :  { %826 = shalt.err (!%p823_p12)
}
 0x34d   :  { %s827_s6 = scalar_lea.hbm %s1226_s5, 4096 }
 0x34e   :  { %p828_p13 = scmp.ne.s32.totalorder %s1226_s5, %s827_s6  ;;  %p831_p0 = scmp.lt.u32.totalorder %s827_s6, %s1226_s5 }
 0x350   :  { %p833_p1 = pnand %p831_p0, %p828_p13 }
 0x352   :  { %836 = shalt.err (!%p833_p1)
}
 0x353   :  { %723 = dma.vmem_to_hbm [thread:$0]  %s718_s3, 4096, %s1226_s5, [#allocation4], %s842_s28, %s842_s28, %s843_s29  }
 0x354   :  { %839 = dma.done.wait [#allocation4], 4096  }
 0x355   :  { %840 = vsyncadd [#allocation4], 4294963200 }
 0x356   :  { %727 = vsyncpa [#allocation3], 1 }
 0x357   :  { %728 = vsyncpa [#allocation4], 1 }

</bundles_post_ra>
